<compile_context>
chip_gen: v7x
topology: tpu7x:2x2x1
jax: 0.10.0
libtpu: 0.0.40
codegen_flags: <defaults>
</compile_context>

<pallas_src>
import functools

import jax
import jax.numpy as jnp
from jax.experimental import pallas as pl
from jax.experimental.pallas import tpu as pltpu


# --------------------------------------------------------------------------- #
# Kernel
# --------------------------------------------------------------------------- #
def _lastblock_kernel(x_ref, wconv_ref, wlin_ref, blin_ref, o_ref, carry_ref, *,
                      dilation, pad, time_tile, block_n, use_roll, single_tile,
                      use_bf16_matmul):
    # x_ref    : (Nb, C, TT)  current time tile of the input (NCT layout)
    # wconv_ref: (C, K)       depthwise conv weight (one tap row / channel)
    # wlin_ref : (C, C)       nn.Linear weight (out_features, in_features)
    # blin_ref : (C, 1)       effective bias = blin + wlin @ bconv
    # o_ref    : (Nb, C, TT)
    # carry_ref: (Nb, C, CW)  f32 scratch holding causal history across tiles
    j = pl.program_id(1)
    multi = not single_tile

    x = x_ref[...].astype(jnp.float32)                       # (Nb, C, TT)
    wconv = wconv_ref[...].astype(jnp.float32)               # (C, K)
    K = wconv.shape[1]

    # Tap K-1 is the aligned one (shift 0): its contribution is just x itself.
    acc = x * wconv[None, :, K - 1:K]

    if pad > 0:
        if multi:
            @pl.when(j == 0)
            def _():
                carry_ref[...] = jnp.zeros_like(carry_ref)

        if use_roll:
            # XLU rolls + lane-index masks: no concat copy, no misaligned
            # slices.  carry holds the full previous tile, so for any shift
            # s <= TT the wrapped-around part of roll(src, s) is exactly the
            # causal history when we pre-blend the tile tails.
            lane = jax.lax.broadcasted_iota(jnp.int32, x.shape, dimension=2)
            prev = carry_ref[...] if multi else None
            for k in range(K - 1):
                s = (K - 1 - k) * dilation
                tail = lane >= time_tile - s
                src = jnp.where(tail, prev, x) if multi else jnp.where(tail, 0.0, x)
                acc = acc + pltpu.roll(src, shift=s, axis=2) * wconv[None, :, k:k + 1]
            if multi:
                @pl.when(j + 1 < pl.num_programs(1))
                def _():
                    carry_ref[...] = x
        else:
            # Fallback (tiny / unaligned tiles, or pad > tile): explicit causal
            # concat, as in the straightforward implementation.
            hist = (carry_ref[...] if multi
                    else jnp.zeros((block_n, x.shape[1], pad), jnp.float32))
            xp = jnp.concatenate([hist, x], axis=2)           # (Nb, C, TT+pad)
            for k in range(K - 1):
                off = k * dilation
                acc = acc + xp[:, :, off:off + time_tile] * wconv[None, :, k:k + 1]
            if multi:
                @pl.when(j + 1 < pl.num_programs(1))
                def _():
                    carry_ref[...] = xp[:, :, time_tile:time_tile + pad]

    # Residual add: reuse the already-resident input tile (no extra DMA).
    h = acc + x                                               # (Nb, C, TT)

    # Channel-mixing linear on the MXU: y = Wlin @ h + (blin + Wlin @ bconv).
    bias = blin_ref[...].astype(jnp.float32)                  # (C, 1)
    wl = wlin_ref[...]
    if not use_bf16_matmul:
        wl = wl.astype(jnp.float32)
    for n in range(block_n):                                  # static, unrolled
        hn = h[n].astype(jnp.bfloat16) if use_bf16_matmul else h[n]
        y = jnp.dot(wl, hn, preferred_element_type=jnp.float32) + bias
        o_ref[n] = y.astype(o_ref.dtype)


# --------------------------------------------------------------------------- #
# Tiling heuristics
# --------------------------------------------------------------------------- #
def _carry_width(tt, pad):
    use_roll = (pad > 0) and (pad <= tt) and (tt % 128 == 0)
    return (tt if use_roll else max(pad, 1)), use_roll


def _step_vmem_bytes(block_n, C, tt, carry_w, act_itemsize, wlin_itemsize, K):
    io = 2 * 2 * block_n * C * tt * act_itemsize      # double-buffered in + out
    carry = block_n * C * carry_w * 4                 # f32 scratch
    weights = 2 * (C * K * 4 + C * C * wlin_itemsize + C * 4)
    return io + carry + weights


def _choose_time_tile(T, C, pad, act_itemsize, wlin_itemsize, K, max_tile, budget):
    """Largest lane-aligned (multiple-of-128) divisor of T, capped at max_tile and
    at the VMEM budget; falls back to a single tile covering all of T."""
    for cand in (8192, 4096, 2048, 1024, 512, 384, 256, 128):
        if cand > max_tile or cand > T or T % cand:
            continue
        cw, _ = _carry_width(cand, pad)
        if _step_vmem_bytes(1, C, cand, cw, act_itemsize, wlin_itemsize, K) <= budget:
            return cand
    # TODO(synk): T with no 128-multiple divisor falls back to one full-length
    # tile (masked partial stores / possibly large VMEM for very long T).
    return T


def _choose_block_n(N, C, tt, pad, act_itemsize, wlin_itemsize, K, budget,
                    target_block_bytes=2 << 20):
    """Largest divisor of N whose input block stays under ~target bytes, keeps
    >= 2 steps on the parallel axis (feeds both v7x TCs) and fits the budget."""
    cw, _ = _carry_width(tt, pad)
    best = 1
    for bn in range(1, N + 1):
        if N % bn:
            continue
        if bn > 1 and (N // bn) < 2:
            continue
        if bn * C * tt * act_itemsize > target_block_bytes:
            continue
        if _step_vmem_bytes(bn, C, tt, cw, act_itemsize, wlin_itemsize, K) > budget:
            continue
        best = bn
    return best


# --------------------------------------------------------------------------- #
# Wrapper
# --------------------------------------------------------------------------- #
def lastblock_forward(x_nct, wconv, bconv, wlin, blin, *, kernel_size, dilation,
                      max_time_tile=8192, vmem_budget_bytes=40 << 20):
    """x_nct: (N, C, T). Returns (N, C, T) in x_nct.dtype, matching LastBlock."""
    N, C, T = x_nct.shape
    pad = (kernel_size - 1) * dilation
    act_itemsize = jnp.dtype(x_nct.dtype).itemsize

    # bf16 MXU operands only pay off once the channel-mixing matmul matters.
    use_bf16_matmul = C >= 128
    wlin_arg = wlin.astype(jnp.bfloat16 if use_bf16_matmul else jnp.float32)
    wlin_itemsize = jnp.dtype(wlin_arg.dtype).itemsize

    tt = _choose_time_tile(T, C, pad, act_itemsize, wlin_itemsize, kernel_size,
                           max_time_tile, vmem_budget_bytes)
    block_n = _choose_block_n(N, C, tt, pad, act_itemsize, wlin_itemsize,
                              kernel_size, vmem_budget_bytes)
    num_t_tiles = T // tt
    single_tile = num_t_tiles == 1
    carry_w, use_roll = _carry_width(tt, pad)
    if pad == 0 or single_tile:
        carry_w = 1                                   # scratch unused

    # Fold the conv bias into the linear bias (exact):
    #   Wlin @ (h + bconv) + blin == Wlin @ h + (Wlin @ bconv + blin)
    blin_eff = (blin.astype(jnp.float32)
                + wlin.astype(jnp.float32) @ bconv.astype(jnp.float32)
                ).reshape(C, 1)

    kernel = functools.partial(
        _lastblock_kernel, dilation=dilation, pad=pad, time_tile=tt,
        block_n=block_n, use_roll=use_roll, single_tile=single_tile,
        use_bf16_matmul=use_bf16_matmul)

    vmem_needed = _step_vmem_bytes(block_n, C, tt, carry_w, act_itemsize,
                                   wlin_itemsize, kernel_size) + (4 << 20)
    cp_kwargs = dict(dimension_semantics=("parallel", "arbitrary"))
    if vmem_needed > (14 << 20):  # above the smallest (v5e) default scoped limit
        cp_kwargs["vmem_limit_bytes"] = int(min(max(vmem_needed, 32 << 20), 48 << 20))

    return pl.pallas_call(
        kernel,
        out_shape=jax.ShapeDtypeStruct((N, C, T), x_nct.dtype),
        grid=(N // block_n, num_t_tiles),
        in_specs=[
            pl.BlockSpec((block_n, C, tt), lambda n, j: (n, 0, j)),
            pl.BlockSpec((C, kernel_size), lambda n, j: (0, 0)),
            pl.BlockSpec((C, C), lambda n, j: (0, 0)),
            pl.BlockSpec((C, 1), lambda n, j: (0, 0)),
        ],
        out_specs=pl.BlockSpec((block_n, C, tt), lambda n, j: (n, 0, j)),
        scratch_shapes=[pltpu.VMEM((block_n, C, carry_w), jnp.float32)],
        compiler_params=pltpu.CompilerParams(**cp_kwargs),
    )(x_nct, wconv, wlin_arg, blin_eff)


# --------------------------------------------------------------------------- #
# Pure-JAX reference mirroring the PyTorch forward
# --------------------------------------------------------------------------- #
def lastblock_reference(x_nct, wconv, bconv, wlin, blin, *, kernel_size, dilation):
    N, C, T = x_nct.shape
    pad = (kernel_size - 1) * dilation
    xpad = jnp.pad(x_nct, ((0, 0), (0, 0), (pad, 0)))
    out = jnp.zeros_like(x_nct)
    for k in range(kernel_size):
        out = out + wconv[None, :, k:k + 1] * xpad[:, :, k * dilation:k * dilation + T]
    out = out + bconv[None, :, None]
    h = out + x_nct                              # (N, C, T)
    h_t = jnp.transpose(h, (0, 2, 1))            # (N, T, C)
    y = h_t @ wlin.T + blin[None, None, :]
    return jnp.transpose(y, (0, 2, 1))           # (N, C, T)


def _run_case(N, C, T, kernel_size, dilation, max_time_tile,
              dtype=jnp.float32, atol=2e-5, rtol=1e-4):
    key = jax.random.PRNGKey(0)
    k_x, k_wc, k_bc, k_wl, k_bl = jax.random.split(key, 5)

    x = jax.random.normal(k_x, (N, C, T), dtype=jnp.float32).astype(dtype)
    # Conv1d(C, C, K, groups=C) weight has shape (C, 1, K) -> stored as (C, K).
    wconv = 0.1 * jax.random.normal(k_wc, (C, kernel_size), dtype=jnp.float32)
    bconv = 0.1 * jax.random.normal(k_bc, (C,), dtype=jnp.float32)
    # Linear(C, C): weight ~ N(0, 0.01) as in init_weights(); bias small.
    wlin = 0.01 * jax.random.normal(k_wl, (C, C), dtype=jnp.float32)
    blin = 0.1 * jax.random.normal(k_bl, (C,), dtype=jnp.float32)

    out = lastblock_forward(x, wconv, bconv, wlin, blin,
                            kernel_size=kernel_size, dilation=dilation,
                            max_time_tile=max_time_tile)
    out = jax.block_until_ready(out)
    assert out.shape == (N, C, T) and out.dtype == x.dtype

    ref = lastblock_reference(x.astype(jnp.float32), wconv, bconv, wlin, blin,
                              kernel_size=kernel_size, dilation=dilation)
    assert jnp.allclose(out.astype(jnp.float32), ref, atol=atol, rtol=rtol), \
        f"mismatch vs reference (N={N}, C={C}, T={T}, K={kernel_size}, d={dilation})"


if __name__ == "__main__":
    # Shapes consistent with the module (n_inputs == n_outputs == C, stride=1).
    # 1) Tiny single-tile case (T < 128 -> zero-history causal path).
    _run_case(N=2, C=8, T=16, kernel_size=3, dilation=2, max_time_tile=8192)
    # 2) Time-tiled lane-aligned case: carry + XLU-roll taps across 128-wide tiles.
    _run_case(N=2, C=8, T=256, kernel_size=3, dilation=2, max_time_tile=128)
    # 3) pad > time-tile fallback (explicit causal concat, wide carry).
    _run_case(N=2, C=8, T=256, kernel_size=3, dilation=80, max_time_tile=128)
    # 4) bf16 activations + batch-blocked steps (block_n = 2, roll path).
    _run_case(N=4, C=8, T=512, kernel_size=3, dilation=4, max_time_tile=128,
              dtype=jnp.bfloat16, atol=2e-2, rtol=2e-2)

    print("KERNEL_OK")
</pallas_src>

<mosaic_0001>
module attributes {stable_mosaic.version = 11 : i64} {
  func.func @_lastblock_kernel(%arg0: i32, %arg1: i32, %arg2: memref<1x8x16xf32, #tpu.memory_space<vmem>>, %arg3: memref<8x3xf32, #tpu.memory_space<vmem>>, %arg4: memref<8x8xf32, #tpu.memory_space<vmem>>, %arg5: memref<8x1xf32, #tpu.memory_space<vmem>>, %arg6: memref<1x8x16xf32, #tpu.memory_space<vmem>>, %arg7: memref<1x8x1xf32, #tpu.memory_space<vmem>>) attributes {dimension_semantics = [#tpu.dimension_semantics<parallel>, #tpu.dimension_semantics<arbitrary>], iteration_bounds = array<i64: 2, 1>, scalar_prefetch = 0 : i64, scratch_operands = 1 : i64, tpu.core_type = #tpu.core_type<tc>, window_params = [{transform_indices = @transform_0, window_bounds = array<i64: 1, 8, 16>}, {pipeline_mode = #tpu.pipeline_mode<synchronous>, transform_indices = @transform_1, window_bounds = array<i64: 8, 3>}, {pipeline_mode = #tpu.pipeline_mode<synchronous>, transform_indices = @transform_2, window_bounds = array<i64: 8, 8>}, {pipeline_mode = #tpu.pipeline_mode<synchronous>, transform_indices = @transform_3, window_bounds = array<i64: 8, 1>}, {transform_indices = @transform_4, window_bounds = array<i64: 1, 8, 16>}]} {
    %c0 = arith.constant 0 : index
    %c0_0 = arith.constant 0 : index
    %c0_1 = arith.constant 0 : index
    %0 = vector.load %arg2[%c0, %c0_0, %c0_1] : memref<1x8x16xf32, #tpu.memory_space<vmem>>, vector<1x8x16xf32>
    %c0_2 = arith.constant 0 : index
    %c0_3 = arith.constant 0 : index
    %1 = vector.load %arg3[%c0_2, %c0_3] : memref<8x3xf32, #tpu.memory_space<vmem>>, vector<8x3xf32>
    %2 = vector.extract_strided_slice %1 {offsets = [0, 2], sizes = [8, 1], strides = [1, 1]} : vector<8x3xf32> to vector<8x1xf32>
    %3 = vector.shape_cast %2 : vector<8x1xf32> to vector<1x8x1xf32>
    %4 = vector.broadcast %3 : vector<1x8x1xf32> to vector<1x8x16xf32>
    %5 = arith.mulf %0, %4 : vector<1x8x16xf32>
    %cst = arith.constant 0.000000e+00 : f32
    %6 = vector.broadcast %cst : f32 to vector<1x8x4xf32>
    %7 = tpu.concatenate %6, %0 in 2 : vector<1x8x4xf32>, vector<1x8x16xf32> -> vector<1x8x20xf32>
    %8 = vector.extract_strided_slice %7 {offsets = [0, 0, 0], sizes = [1, 8, 16], strides = [1, 1, 1]} : vector<1x8x20xf32> to vector<1x8x16xf32>
    %9 = vector.extract_strided_slice %1 {offsets = [0, 0], sizes = [8, 1], strides = [1, 1]} : vector<8x3xf32> to vector<8x1xf32>
    %10 = vector.shape_cast %9 : vector<8x1xf32> to vector<1x8x1xf32>
    %11 = vector.broadcast %10 : vector<1x8x1xf32> to vector<1x8x16xf32>
    %12 = arith.mulf %8, %11 : vector<1x8x16xf32>
    %13 = arith.addf %5, %12 : vector<1x8x16xf32>
    %14 = vector.extract_strided_slice %7 {offsets = [0, 0, 2], sizes = [1, 8, 16], strides = [1, 1, 1]} : vector<1x8x20xf32> to vector<1x8x16xf32>
    %15 = vector.extract_strided_slice %1 {offsets = [0, 1], sizes = [8, 1], strides = [1, 1]} : vector<8x3xf32> to vector<8x1xf32>
    %16 = vector.shape_cast %15 : vector<8x1xf32> to vector<1x8x1xf32>
    %17 = vector.broadcast %16 : vector<1x8x1xf32> to vector<1x8x16xf32>
    %18 = arith.mulf %14, %17 : vector<1x8x16xf32>
    %19 = arith.addf %13, %18 : vector<1x8x16xf32>
    %20 = arith.addf %19, %0 : vector<1x8x16xf32>
    %c0_4 = arith.constant 0 : index
    %c0_5 = arith.constant 0 : index
    %21 = vector.load %arg5[%c0_4, %c0_5] : memref<8x1xf32, #tpu.memory_space<vmem>>, vector<8x1xf32>
    %c0_6 = arith.constant 0 : index
    %c0_7 = arith.constant 0 : index
    %22 = vector.load %arg4[%c0_6, %c0_7] : memref<8x8xf32, #tpu.memory_space<vmem>>, vector<8x8xf32>
    %23 = vector.shape_cast %20 : vector<1x8x16xf32> to vector<8x16xf32>
    %cst_8 = arith.constant dense<0.000000e+00> : vector<8x16xf32>
    %24 = tpu.matmul %22, %23, %cst_8 {dimension_numbers = #tpu.dot_dimension_numbers<[1], [0], [0], [1], [0, 0, 1, 1], [], []>} : vector<8x8xf32>, vector<8x16xf32>, vector<8x16xf32> -> vector<8x16xf32>
    %25 = vector.broadcast %21 : vector<8x1xf32> to vector<8x16xf32>
    %26 = arith.addf %24, %25 : vector<8x16xf32>
    %c0_9 = arith.constant 0 : index
    %c0_10 = arith.constant 0 : index
    %c0_11 = arith.constant 0 : index
    %27 = vector.load %arg6[%c0_9, %c0_10, %c0_11] : memref<1x8x16xf32, #tpu.memory_space<vmem>>, vector<1x8x16xf32>
    %28 = vector.shape_cast %27 : vector<1x8x16xf32> to vector<8x16xf32>
    %29 = vector.shape_cast %26 : vector<8x16xf32> to vector<1x8x16xf32>
    tpu.vector_store %arg6[%c0_9, %c0_10, %c0_11], %29 {strides = array<i32>} : memref<1x8x16xf32, #tpu.memory_space<vmem>>, vector<1x8x16xf32>,
    return
  }
  func.func @transform_0(%arg0: i32, %arg1: i32) -> (i32, i32, i32) {
    %c0_i32 = arith.constant 0 : i32
    %c0_i32_0 = arith.constant 0 : i32
    return %arg0, %c0_i32, %arg1 : i32, i32, i32
  }
  func.func @transform_1(%arg0: i32, %arg1: i32) -> (i32, i32) {
    %c0_i32 = arith.constant 0 : i32
    %c0_i32_0 = arith.constant 0 : i32
    %c0_i32_1 = arith.constant 0 : i32
    return %c0_i32, %c0_i32_0 : i32, i32
  }
  func.func @transform_2(%arg0: i32, %arg1: i32) -> (i32, i32) {
    %c0_i32 = arith.constant 0 : i32
    %c0_i32_0 = arith.constant 0 : i32
    %c0_i32_1 = arith.constant 0 : i32
    return %c0_i32, %c0_i32_0 : i32, i32
  }
  func.func @transform_3(%arg0: i32, %arg1: i32) -> (i32, i32) {
    %c0_i32 = arith.constant 0 : i32
    %c0_i32_0 = arith.constant 0 : i32
    %c0_i32_1 = arith.constant 0 : i32
    return %c0_i32, %c0_i32_0 : i32, i32
  }
  func.func @transform_4(%arg0: i32, %arg1: i32) -> (i32, i32, i32) {
    %c0_i32 = arith.constant 0 : i32
    %c0_i32_0 = arith.constant 0 : i32
    return %arg0, %c0_i32, %arg1 : i32, i32, i32
  }
}

</mosaic_0001>

<bundles_post_ra>
// kernel: tpu_custom_call.1
= control target key start
LH: loop header
LB: loop body
LE: loop exit
PB: predicated region body
PF: predicated region fallthrough
CT: control target
= control target key end

     0   :  { %9 = vsyncpa [#allocation4], 0  ;;  %s737_s0 = inlined_call_operand.vmem [shape: f32[2,8,16], index: 0, kind: input, shape index: {}]   ;;  %s738_s1 = inlined_call_operand.vmem [shape: f32[8,3], index: 1, kind: input, shape index: {}]   ;;  %s739_s2 = inlined_call_operand.vmem [shape: f32[8,8], index: 2, kind: input, shape index: {}]   ;;  %s740_s3 = inlined_call_operand.vmem [shape: f32[8,1], index: 3, kind: input, shape index: {}]   ;;  %s741_s4 = inlined_call_operand.hbm [shape: f32[2,8,16], index: 4, kind: output, shape index: {}]  }
   0x1   :  { %11 = vsyncpa [#allocation4 + $0x1], 0  ;;  %s616_s15 = smov 0   ;;  %s618_s16 = smov 0  }
   0x2   :  { %s620_s17 = smov 0   ;;  %s622_s18 = smov 0  }
   0x3   :  { %s624_s19 = smov 0   ;;  %s626_s20 = smov 0  }
   0x4 LB: > { %s418_s21 = sadd.s32 4294967295, %s581_s20   ;;  %s419_s22 = sadd.s32 4294967294, %s581_s20   ;;  %s581_s20 = sphi %s626_s20, %s17_s20   ;;  %s577_s19 = sphi %s624_s19, %s748_s19   ;;  %s573_s18 = sphi %s622_s18, %s747_s18   ;;  %s569_s17 = sphi %s620_s17, %s746_s17   ;;  %s565_s16 = sphi %s618_s16, %s745_s16   ;;  %s561_s15 = sphi %s616_s15, %s744_s15  }
   0x5   : > { %s29_s23 = sadd.s32 1, %s577_s19  ;;  %s129_s24 = sadd.s32 1, %s569_s17 }
   0x6   : > { %p31_p0 = scmp.ge.s32.totalorder %s29_s23, 2  ;;  %p139_p1 = scmp.ne.s32.totalorder %s569_s17, %s565_s16 }
   0x7   : > { %p140_p2 = scmp.eq.s32.totalorder %s418_s21, 1  ;;  %p145_p3 = scmp.ne.s32.totalorder %s565_s16, %s561_s15 }
   0x8   : > { %s750_s23 = smov (%p31_p0, %s29_s23), 0  ;;  %p146_p5 = scmp.eq.s32.totalorder %s419_s22, 1 }
   0x9   : > { %p656_p4 = por %p140_p2, %p139_p1  ;;  %s124_s26 = ssub.s32 %s577_s19, %s750_s23 }
   0xa   : > { %p422_p6 = scmp.ge.s32.totalorder %s581_s20, 1  ;;  %p127_p7 = scmp.eq.s32.totalorder %s124_s26, 0 }
   0xb   : > { %p663_p8 = por %p146_p5, %p145_p3  ;;  %p183_p9 = scmp.lt.s32.totalorder %s581_s20, 3 }
   0xc   : > { %s669_s28 = scalar_select %p127_p7, %s569_s17, %s129_s24  }
   0xd   : > { %p184_p10 = pnand %p422_p6, %p183_p9 }
   0xe   : > { %v219_v0 = vld [vmem:[%s738_s1] sm:$0xff] (!%p184_p10)  ;;  %p211_p11 = scmp.lt.s32.totalorder (!%p184_p10), %s573_s18, 1  ;;  %v583_v1 = vmov (!%p184_p10), 1   ;;  %v584_v2 = vmov (!%p184_p10), 2   ;;  %v585_v3 = vmov (!%p184_p10), 0   ;;  %s586_s10 = smov (!%p184_p10), 4  }
   0xf   : > { %187 = sbr.rel (%p184_p10) target bundleno = 499 (0x1f3), region = 36  ;;  %499 = vset.pattern.permute.xlu0 (!%p184_p10), %v583_v1  ;;  %500 = vset.pattern.permute.xlu1 (!%p184_p10), %v584_v2  ;;  %v249_v5 = vld [vmem:[%s740_s3] sm:$0xff] (!%p184_p10)  ;;  %v587_v6 = vmov (!%p184_p10), 0.0   ;;  %vm588_vm0 = vmmov (!%p184_p10), 0   ;;  %vm230_vm1 = vcmask (!%p184_p10), 31744   ;;  %s589_s13 = smov (!%p184_p10), 126  }
  0x10   : > { %222 = vperm.xlu1 (!%p184_p10), %500, %v219_v0   ;;  %239 = vperm.xlu0 (!%p184_p10), %499, %v219_v0   ;;  %v250_v19 = vld [vmem:[%s739_s2] sm:$0xff] (!%p184_p10)  ;;  %vm256_vm2 = vcmask (!%p184_p10), 64512   ;;  %s208_s22 = sand.u32 (!%p184_p10), 1, %s565_s16   ;;  %s427_s26 = sshll.u32 (!%p184_p10), %s573_s18, 7  ;;  %vm330_vm3 = vcmask (!%p184_p10), 130048  }
  0x11   : > { %432 = vmatprep.subr.mxu0 (!%p184_p10), %v587_v6  ;;  %434 = vmatprep.mubr.msk.f32.mxu0 (!%p184_p10), %vm588_vm0, %v587_v6  ;;  %s423_s24 = sshll.u32 (!%p184_p10), %s208_s22, 3  ;;  %s690_s7 = scalar_lea.hbm (!%p184_p10), %s741_s4, %s427_s26 }
  0x12   : > { %s210_s29 = scalar_lea.vmem (!%p184_p10), [#allocation3], %s423_s24  ;;  %s333_s8 = scalar_lea.sflag (!%p184_p10), [#allocation4], %s208_s22 }
  0x13   : > { %s347_s30 = sshll.u32 (!%p184_p10), %s210_s29, 4  ;;  %s692_s30 = int_to_ptr.vmem [resolvable:$true] %s347_s30 }
  0x14   : > { %501 = vset.pattern.permute.xlu1 (!%p184_p10), %v585_v3  ;;  %502 = vset.pattern.permute.xlu0 (!%p184_p10), %v585_v3 }
  0x15   : > { %233 = vperm.xlu1 (!%p184_p10), %501, %v219_v0  }
  0x16   : > { %s212_s5 = scalar_select %p211_p11, %s573_s18, 1 }
  0x17   : > { %s503_s18 = scalar_lea.vmem %s692_s30, 128 }
  0x18   : > { %s424_s6 = sshll.u32 %s212_s5, 3  ;;  %p504_p12 = scmp.ne.s32.totalorder %s692_s30, %s503_s18 }
  0x19   : > { %s217_s9 = scalar_lea.vmem %s737_s0, %s424_s6  ;;  %253 = vperm.xlu1 %501, %v249_v5  }
  0x1a   : > { %v218_v4 = vld [vmem:[%s217_s9] sm:$0xff]  ;;  %p505_p13 = pnand %p504_p12, %p656_p4  ;;  %s590_s9 = smov [#allocation3]  }
  0x1b   : > { %227 = vrot.lane.b32.xlu0 %v218_v4, %s586_s10  ;;  %s507_s10 = sshll.u32 %s590_s9, 4  ;;  %s508_s10 = int_to_ptr.vmem [resolvable:$false] %s507_s10 }
  0x1c   : > { %p506_p0 = pneg %p505_p13  ;;  %s509_s11 = scalar_lea.vmem %s508_s10, 256 }
  0x1d   : > { %p510_p1 = scmp.lt.s32.totalorder %s692_s30, %s508_s10  ;;  %p511_p2 = scmp.lt.s32.totalorder %s509_s11, %s503_s18 }
  0x1f   : > { %p512_p3 = por %p511_p2, %p510_p1 }
  0x21   : > { %p513_p5 = pnand %p512_p3, %p506_p0 }
  0x8f   : > { %v240_v7 = vpop.permute.xlu0 %239  ;;  %v223_v11 = vpop.permute.xlu1 %222 }
  0x90   : > { %v225_v13 = vmul.f32 %v223_v11, %v218_v4 }
  0x93   : > { %v228_v8 = vpop.permute.xlu0 %227 }
  0x94   : > { %v231_v9 = vsel %vm230_vm1, 0.0, %v228_v8  ;;  %v234_v12 = vpop.permute.xlu1 %233 }
  0x95   : > { %v242_v10 = vmul.f32 %v240_v7, %v231_v9  ;;  %v236_v14 = vmul.f32 %v234_v12, %v231_v9 }
  0x97   : > { %244 = vrot.lane.b32.xlu0 %v242_v10, %s589_s13  ;;  %v237_v15 = vadd.f32 %v236_v14, %v225_v13 }
  0x98   : > { %v254_v20 = vpop.permute.xlu1 %253 }
 0x109   : > { %v245_v16 = vpop.permute.xlu0 %244 }
 0x10a   : > { %v247_v17 = vadd.f32 %v245_v16, %v237_v15 }
 0x10c   : > { %v248_v18 = vadd.f32 %v247_v17, %v218_v4 }
 0x10e   : > { %433 = vmatpush3.msra.mxu0 %v248_v18 }
 0x10f   : > { %435 = vmatmul.mubr.msk.f32.vlgmr.msra.gmra.mrb[0].mxu0 %vm256_vm2, %v250_v19 }
 0x1e2   : > { %v326_v21 = vpop.f32.mrb[0].mxu0 }
 0x1e3   : > { %v327_v22 = vadd.f32 %v326_v21, %v254_v20  ;;  %v436_v23 = vpop.f32.mrb[1].mxu0 }
 0x1e5   : > { %331 = vst.msk [vmem:[%s210_s29] sm:$0xff] %vm330_vm3, %v327_v22 }
 0x1e6   : > { %516 = shalt.err (!%p513_p5)
}
 0x1e7   : > { %s517_s12 = scalar_lea.hbm %s690_s7, 128  ;;  %s521_s21 = scalar_lea.hbm %s741_s4, 256 }
 0x1e8   : > { %p518_p6 = scmp.ne.s32.totalorder %s690_s7, %s517_s12  ;;  %p522_p10 = scmp.lt.u32.totalorder %s690_s7, %s741_s4 }
 0x1e9   : > { %p523_p11 = scmp.lt.u32.totalorder %s521_s21, %s517_s12  ;;  %p525_p13 = scmp.lt.u32.totalorder %s517_s12, %s690_s7 }
 0x1ea   : > { %p519_p7 = pnand %p518_p6, %p656_p4 }
 0x1eb   : > { %p524_p12 = por %p523_p11, %p522_p10 }
 0x1ec   : > { %p520_p9 = pneg %p519_p7 }
 0x1ed   : > { %p526_p0 = por %p525_p13, %p524_p12 }
 0x1ef   : > { %p527_p1 = pnand %p526_p0, %p520_p9 }
 0x1f1   : > { %530 = shalt.err (!%p527_p1)
}
 0x1f2   : > { %437 = dma.vmem_to_hbm [thread:$0]  (%p656_p4), %s692_s30, 128, %s690_s7, %s333_s8  }
 0x1f3 PF: > { %p443_p2 = scmp.ge.s32.totalorder %s581_s20, 2  ;;  %s359_s26 = sand.u32 1, %s561_s15  }
 0x1f4   : > { %s360_s29 = scalar_lea.sflag [#allocation4], %s359_s26 }
 0x1f5   : > { %p440_p3 = pnand %p443_p2, %p663_p8 }
 0x1f7   : > { %556 = dma.done.wait (!%p440_p3), %s360_s29, 128  }
 0x1f8   : > { %558 = vsyncadd (!%p440_p3), %s360_s29, 4294967168  ;;  %s17_s20 = sadd.s32 1, %s581_s20   ;;  %s744_s15 = smov %s565_s16 }
 0x1f9   : > { %p14_p5 = scmp.ge.s32.totalorder %s17_s20, 4   ;;  %s745_s16 = smov %s569_s17 }
 0x1fa   : > { %s746_s17 = smov %s669_s28  ;;  %s747_s18 = smov %s577_s19 }
 0x1fb   : > { %s748_s19 = smov %s750_s23  ;;  %16 = sbr.rel (!%p14_p5) target bundleno = 4 (0x4), region = 71 }
 0x202   :  { %365 = vsyncpa [#allocation4], 1 }
 0x203   :  { %367 = vsyncpa [#allocation4 + $0x1], 1 }

</bundles_post_ra>
